<compile_context>
chip_gen: v6e
topology: v6e:2x2x1
jax: 0.10.0
libtpu: 0.0.40
codegen_flags: <defaults>
</compile_context>

<pallas_src>
import jax
import jax.numpy as jnp
from jax.experimental import pallas as pl
from jax.experimental.pallas import tpu as pltpu


def _one_hot_kernel(t_ref, out_ref):
    # t_ref:   (1, T)  int32   class index per spatial position (lane-dense)
    # out_ref: (C, T)  float32 one-hot: class axis on sublanes, spatial on lanes
    c, t = out_ref.shape
    idx = t_ref[...]                                            # (1, T)
    classes = jax.lax.broadcasted_iota(jnp.int32, (c, t), 0)    # (C, T)
    out_ref[...] = (idx == classes).astype(jnp.float32)


def one_hot_encode(t: jax.Array, n_classes: int, *, max_tile_hw: int = 4096) -> jax.Array:
    """Pallas equivalent of OneHotEncoder.forward.

    t: integer array of class indices, shape (N, d1, ..., dk).
    returns float32 array of shape (N, n_classes, d1, ..., dk) (NCHW layout).
    """
    batch = t.shape[0]
    spatial_shape = t.shape[1:]
    s = 1
    for d in spatial_shape:
        s *= d

    # Lane-dense spatial tile. Budget the double-buffered output tile
    # (2 * C * T * 4 bytes) to <= 16 MiB so it fits every generation's scoped
    # VMEM (v7x: 64 MiB physical / 32 MiB default scoped limit).
    vmem_budget = 16 * 1024 * 1024
    max_t_by_vmem = max(128, (vmem_budget // (2 * 4 * n_classes)) // 128 * 128)
    t_hw = min(max_tile_hw, max_t_by_vmem, pl.cdiv(s, 128) * 128)
    s_pad = pl.cdiv(s, t_hw) * t_hw

    flat = t.reshape(batch, s).astype(jnp.int32)
    if s_pad != s:
        # Padded spatial positions are sliced off after the kernel, so the
        # class-0 encoding they receive never reaches the output.
        flat = jnp.pad(flat, ((0, 0), (0, s_pad - s)), constant_values=0)
    flat3d = flat.reshape(batch, 1, s_pad)

    grid = (batch, s_pad // t_hw)
    out = pl.pallas_call(
        _one_hot_kernel,
        out_shape=jax.ShapeDtypeStruct((batch, n_classes, s_pad), jnp.float32),
        grid_spec=pltpu.PrefetchScalarGridSpec(
            num_scalar_prefetch=0,
            grid=grid,
            in_specs=[
                pl.BlockSpec((None, 1, t_hw), lambda n, si: (n, 0, si)),
            ],
            out_specs=pl.BlockSpec(
                (None, n_classes, t_hw), lambda n, si: (n, 0, si)
            ),
        ),
        compiler_params=pltpu.CompilerParams(
            dimension_semantics=("parallel", "parallel"),
            vmem_limit_bytes=32 * 1024 * 1024,
        ),
    )(flat3d)

    if s_pad != s:
        out = out[:, :, :s]
    # Free reshape: layout is already channel-second contiguous (NCHW).
    return out.reshape((batch, n_classes) + spatial_shape)


def _reference_one_hot(t: jax.Array, n_classes: int) -> jax.Array:
    n_dim = t.ndim
    oh = jax.nn.one_hot(t.astype(jnp.int32), n_classes, dtype=jnp.float32)
    perm = (0, n_dim) + tuple(range(1, n_dim))
    return jnp.transpose(oh, perm)


if __name__ == "__main__":
    key = jax.random.PRNGKey(0)
    N, H, W = 2, 16, 16
    n_classes = 4

    t = jax.random.randint(key, (N, H, W), 0, n_classes, dtype=jnp.int32)

    out = one_hot_encode(t, n_classes)
    out = jax.block_until_ready(out)

    assert out.shape == (N, n_classes, H, W), out.shape
    assert out.dtype == jnp.float32, out.dtype

    ref = _reference_one_hot(t, n_classes)
    assert jnp.array_equal(out, ref), "mismatch vs reference one-hot"

    print("KERNEL_OK")
</pallas_src>

<mosaic_0001>
module attributes {stable_mosaic.version = 11 : i64} {
  func.func @_one_hot_kernel(%arg0: i32, %arg1: i32, %arg2: memref<1x1x256xi32, #tpu.memory_space<vmem>>, %arg3: memref<1x4x256xf32, #tpu.memory_space<vmem>>) attributes {dimension_semantics = [#tpu.dimension_semantics<parallel>, #tpu.dimension_semantics<parallel>], iteration_bounds = array<i64: 2, 1>, scalar_prefetch = 0 : i64, scratch_operands = 0 : i64, tpu.core_type = #tpu.core_type<tc>, window_params = [{transform_indices = @transform_0, window_bounds = array<i64: 1, 1, 256>}, {transform_indices = @transform_1, window_bounds = array<i64: 1, 4, 256>}]} {
    %c0 = arith.constant 0 : index
    %c0_0 = arith.constant 0 : index
    %c0_1 = arith.constant 0 : index
    %0 = vector.load %arg2[%c0, %c0_0, %c0_1] : memref<1x1x256xi32, #tpu.memory_space<vmem>>, vector<1x1x256xi32>
    %1 = vector.shape_cast %0 : vector<1x1x256xi32> to vector<1x256xi32>
    %2 = tpu.iota {dimensions = array<i32: 0>} : vector<4x256xi32>
    %3 = vector.broadcast %1 : vector<1x256xi32> to vector<4x256xi32>
    %4 = arith.cmpi eq, %3, %2 : vector<4x256xi32>
    %5 = arith.extui %4 : vector<4x256xi1> to vector<4x256xi32>
    %6 = arith.sitofp %5 : vector<4x256xi32> to vector<4x256xf32>
    %c0_2 = arith.constant 0 : index
    %c0_3 = arith.constant 0 : index
    %c0_4 = arith.constant 0 : index
    %7 = vector.load %arg3[%c0_2, %c0_3, %c0_4] : memref<1x4x256xf32, #tpu.memory_space<vmem>>, vector<1x4x256xf32>
    %8 = vector.shape_cast %7 : vector<1x4x256xf32> to vector<4x256xf32>
    %9 = vector.shape_cast %6 : vector<4x256xf32> to vector<1x4x256xf32>
    tpu.vector_store %arg3[%c0_2, %c0_3, %c0_4], %9 {strides = array<i32>} : memref<1x4x256xf32, #tpu.memory_space<vmem>>, vector<1x4x256xf32>,
    return
  }
  func.func @transform_0(%arg0: i32, %arg1: i32) -> (i32, i32, i32) {
    %c0_i32 = arith.constant 0 : i32
    %c0_i32_0 = arith.constant 0 : i32
    return %arg0, %c0_i32, %arg1 : i32, i32, i32
  }
  func.func @transform_1(%arg0: i32, %arg1: i32) -> (i32, i32, i32) {
    %c0_i32 = arith.constant 0 : i32
    %c0_i32_0 = arith.constant 0 : i32
    return %arg0, %c0_i32, %arg1 : i32, i32, i32
  }
}

</mosaic_0001>

<bundles_post_ra>
// kernel: tpu_custom_call.1
= control target key start
LH: loop header
LB: loop body
LE: loop exit
PB: predicated region body
PF: predicated region fallthrough
CT: control target
= control target key end

     0   :  { %6 = vsyncpa [#allocation3], 0  ;;  %s616_s0 = inlined_call_operand.hbm [shape: s32[2,1,256], index: 0, kind: input, shape index: {}]   ;;  %s617_s1 = inlined_call_operand.hbm [shape: f32[2,4,256], index: 1, kind: output, shape index: {}]  }
   0x1   :  { %8 = vsyncpa [#allocation3 + $0x1], 0 }
   0x2   :  { %9 = vsyncpa [#allocation4], 0 }
   0x3   :  { %11 = vsyncpa [#allocation4 + $0x1], 0  ;;  %s481_s6 = smov 0   ;;  %s483_s7 = smov 0  }
   0x4   :  { %s485_s8 = smov 0   ;;  %s487_s9 = smov 0  }
   0x5   :  { %s489_s10 = smov 0   ;;  %s491_s11 = smov 0  }
   0x6 LB: > { %s276_s12 = sadd.s32 4294967295, %s466_s11   ;;  %s277_s13 = sadd.s32 4294967294, %s466_s11   ;;  %s466_s11 = sphi %s491_s11, %s17_s11   ;;  %s462_s10 = sphi %s489_s10, %s629_s10   ;;  %s458_s9 = sphi %s487_s9, %s628_s9   ;;  %s454_s8 = sphi %s485_s8, %s627_s8   ;;  %s450_s7 = sphi %s483_s7, %s626_s7   ;;  %s446_s6 = sphi %s481_s6, %s625_s6  }
   0x7   : > { %s29_s14 = sadd.s32 1, %s462_s10  ;;  %s38_s15 = sadd.s32 1, %s454_s8 }
   0x8   : > { %p31_p0 = scmp.ge.s32.totalorder %s29_s14, 2  ;;  %p45_p1 = scmp.ne.s32.totalorder %s454_s8, %s450_s7 }
   0x9   : > { %p46_p2 = scmp.eq.s32.totalorder %s466_s11, 0  ;;  %p51_p3 = scmp.ne.s32.totalorder %s450_s7, %s446_s6 }
   0xa   : > { %s631_s14 = smov (%p31_p0, %s29_s14), 0  ;;  %p52_p5 = scmp.eq.s32.totalorder %s276_s12, 0 }
   0xb   : > { %p522_p4 = por %p46_p2, %p45_p1  ;;  %s33_s17 = ssub.s32 %s462_s10, %s631_s14 }
   0xc   : > { %p77_p6 = scmp.eq.s32.totalorder %s276_s12, 1  ;;  %p36_p7 = scmp.eq.s32.totalorder %s33_s17, 0 }
   0xd   : > { %p528_p8 = por %p52_p5, %p51_p3  ;;  %p83_p10 = scmp.eq.s32.totalorder %s277_s13, 1 }
   0xe   : > { %p532_p9 = por %p77_p6, %p45_p1  ;;  %p307_p13 = scmp.lt.s32.totalorder %s466_s11, 2 }
   0xf   : > { %s537_s20 = scalar_select %p36_p7, %s454_s8, %s38_s15  }
  0x10   : > { %p539_p11 = por %p83_p10, %p51_p3  ;;  %s103_s22 = sand.u32 1, %s454_s8  }
  0x11   : > { %s280_s23 = sshll.u32 %s103_s22, 1  ;;  %s293_s24 = sshll.u32 %s462_s10, 5 }
  0x12   : > { %s621_s21 = scalar_select %p539_p11, 1, 0 }
  0x13   : > { %s115_s27 = scalar_lea.hbm %s616_s0, %s293_s24  ;;  %s107_s28 = scalar_lea.vmem [#allocation2], %s280_s23 }
  0x14   : > { %s117_s29 = sshll.u32 %s107_s28, 4  ;;  %p552_p0 = pnand %p307_p13, %p522_p4  ;;  %s118_s29 = int_to_ptr.vmem [resolvable:$true] %s117_s29 }
  0x15   : > { %p283_p1 = scmp.ge.s32.totalorder %s466_s11, 1  ;;  %p122_p2 = scmp.lt.s32.totalorder %s466_s11, 3 }
  0x16   : > { %s104_s2 = scalar_lea.sflag [#allocation3], %s103_s22  ;;  %p360_p3 = pneg %p552_p0 }
  0x17   : > { %s371_s3 = scalar_lea.vmem %s118_s29, 32  ;;  %s468_s4 = smov [#allocation2]  }
  0x18   : > { %p372_p5 = scmp.ne.s32.totalorder %s118_s29, %s371_s3  ;;  %s376_s5 = sshll.u32 %s468_s4, 4  ;;  %s377_s5 = int_to_ptr.vmem [resolvable:$false] %s376_s5 }
  0x19   : > { %s378_s12 = scalar_lea.vmem %s377_s5, 64  ;;  %p379_p10 = scmp.lt.s32.totalorder %s118_s29, %s377_s5 }
  0x1a   : > { %p374_p6 = pnand %p372_p5, %p360_p3  ;;  %p380_p12 = scmp.lt.s32.totalorder %s378_s12, %s371_s3 }
  0x1c   : > { %p375_p7 = pneg %p374_p6  ;;  %p381_p4 = por %p380_p12, %p379_p10 }
  0x1e   : > { %p382_p13 = pnand %p381_p4, %p375_p7 }
  0x20   : > { %385 = shalt.err (!%p382_p13)
}
  0x21   : > { %302 = dma.hbm_to_vmem [thread:$0]  (!%p552_p0), %s115_s27, 32, %s118_s29, %s104_s2  }
  0x22   : > { %p123_p11 = pnand %p283_p1, %p122_p2 }
  0x23   : > { %s567_s13 = sand.u32 (!%p123_p11), 1, %s450_s7  }
  0x24   : > { %126 = sbr.rel (%p123_p11) target bundleno = 67 (0x43), region = 24  ;;  %s284_s15 = sshll.u32 (!%p123_p11), %s567_s13, 1 }
  0x25   : > { %s129_s16 = scalar_lea.sflag (!%p123_p11), [#allocation3], %s567_s13  ;;  %s132_s17 = scalar_lea.vmem (!%p123_p11), [#allocation2], %s284_s15 }
  0x29   : > { %437 = dma.done.wait (%p528_p8), %s129_s16, 32  }
  0x2a   : > { %439 = vsyncadd (%p528_p8), %s129_s16, 4294967264  ;;  %v154_v0 = vlaneseq  ;;  %s285_s22 = sshll.u32 %s567_s13, 3  ;;  %v153_v4 = vld [vmem:[%s132_s17] sm:$0x3]  ;;  %s294_s25 = sshll.u32 %s458_s9, 7  ;;  %v469_v7 = vmov 0.0  }
  0x2b   : > { %s150_s23 = scalar_lea.vmem [#allocation5], %s285_s22  ;;  %s190_s27 = scalar_lea.hbm %s617_s1, %s294_s25 }
  0x2c   : > { %v155_v1 = vshrl.u32 %v154_v0, 7  ;;  %s192_s24 = sshll.u32 %s150_s23, 4  ;;  %s176_s28 = scalar_lea.sflag [#allocation4], %s567_s13  ;;  %s193_s24 = int_to_ptr.vmem [resolvable:$true] %s192_s24 }
  0x2d   : > { %s386_s29 = scalar_lea.vmem %s193_s24, 128  ;;  %s470_s30 = smov [#allocation5]  }
  0x2e   : > { %v158_v2 = vsub.s32 0, %v155_v1  ;;  %v162_v3 = vsub.s32 1, %v155_v1  ;;  %p387_p8 = scmp.ne.s32.totalorder %s193_s24, %s386_s29  ;;  %s390_s9 = sshll.u32 %s470_s30, 4  ;;  %s391_s9 = int_to_ptr.vmem [resolvable:$false] %s390_s9 }
  0x2f   : > { %s392_s2 = scalar_lea.vmem %s391_s9, 256  ;;  %p393_p0 = scmp.lt.s32.totalorder %s193_s24, %s391_s9 }
  0x30   : > { %v159_v5 = vrot.slane %v153_v4, %v158_v2  ;;  %v163_v6 = vrot.slane %v153_v4, %v162_v3  ;;  %p388_p11 = pnand %p387_p8, %p532_p9  ;;  %p394_p1 = scmp.lt.s32.totalorder %s392_s2, %s386_s29 }
  0x32   : > { %vm164_vm0 = vcmp.eq.s32.totalorder %v159_v5, %v155_v1  ;;  %vm165_vm1 = vcmp.eq.s32.totalorder %v163_v6, %v155_v1  ;;  %p389_p12 = pneg %p388_p11  ;;  %p395_p2 = por %p394_p1, %p393_p0 }
  0x33   : > { %v286_v8 = vsel %vm164_vm0, 1.0, %v469_v7  ;;  %v287_v9 = vsel %vm165_vm1, 1.0, %v469_v7 }
  0x34   : > { %v172_v10 = vcombine.low %v286_v8, %v287_v9  ;;  %p396_p3 = pnand %p395_p2, %p389_p12 }
  0x36   : > { %174 = vst [vmem:[%s150_s23] sm:$0xff] %v172_v10 }
  0x37   : > { %399 = shalt.err (!%p396_p3)
}
  0x38   : > { %s400_s3 = scalar_lea.hbm %s190_s27, 128  ;;  %s404_s12 = scalar_lea.hbm %s617_s1, 256 }
  0x39   : > { %p401_p5 = scmp.ne.s32.totalorder %s190_s27, %s400_s3  ;;  %p405_p10 = scmp.lt.s32.totalorder %s190_s27, %s617_s1 }
  0x3a   : > { %p406_p4 = scmp.lt.s32.totalorder %s404_s12, %s400_s3 }
  0x3b   : > { %p402_p6 = pnand %p401_p5, %p532_p9 }
  0x3c   : > { %p407_p13 = por %p406_p4, %p405_p10 }
  0x3d   : > { %p403_p7 = pneg %p402_p6 }
  0x3f   : > { %p408_p8 = pnand %p407_p13, %p403_p7 }
  0x41   : > { %411 = shalt.err (!%p408_p8)
}
  0x42   : > { %297 = dma.vmem_to_hbm [thread:$0]  (%p532_p9), %s193_s24, 128, %s190_s27, %s176_s28  }
  0x43 PF: > { %s204_s16 = sand.u32 1, %s446_s6   ;;  %p623_p11 = scmp.ne.s32.totalorder %s621_s21, 0 }
  0x44   : > { %p624_p12 = scmp.ge.s32.totalorder %s466_s11, 2  ;;  %s205_s17 = scalar_lea.sflag [#allocation4], %s204_s16 }
  0x46   : > { %p304_p0 = pnand %p624_p12, %p623_p11 }
  0x48   : > { %p305_p1 = pneg %p304_p0 }
  0x4a   : > { %441 = dma.done.wait (%p305_p1), %s205_s17, 128  }
  0x4b   : > { %443 = vsyncadd (%p305_p1), %s205_s17, 4294967168  ;;  %s17_s11 = sadd.s32 1, %s466_s11   ;;  %s625_s6 = smov %s450_s7 }
  0x4c   : > { %p14_p2 = scmp.ge.s32.totalorder %s17_s11, 4   ;;  %s626_s7 = smov %s454_s8 }
  0x4d   : > { %s627_s8 = smov %s537_s20  ;;  %s628_s9 = smov %s462_s10 }
  0x4e   : > { %s629_s10 = smov %s631_s14  ;;  %16 = sbr.rel (!%p14_p2) target bundleno = 6 (0x6), region = 69 }
  0x53   :  { %210 = vsyncpa [#allocation3], 1 }
  0x54   :  { %212 = vsyncpa [#allocation3 + $0x1], 1 }
  0x55   :  { %213 = vsyncpa [#allocation4], 1 }
  0x56   :  { %215 = vsyncpa [#allocation4 + $0x1], 1 }

</bundles_post_ra>
